<compile_context>
chip_gen: v7x
topology: tpu7x:2x2x1
jax: 0.10.0
libtpu: 0.0.40
codegen_flags: <defaults>
</compile_context>

<pallas_src>
import functools

import numpy as np
import jax
import jax.numpy as jnp
from jax.experimental import pallas as pl
from jax.experimental.pallas import tpu as pltpu

OUT_LANES = 128  # lanes [0:n_actions) = log-probs, lane n_actions = value, rest 0


# ----------------------------------------------------------------------------
# Fused kernel: conv1 -> maxpool -> conv2 -> conv3 -> actor+critic heads
# ----------------------------------------------------------------------------
def _fused_pnn_kernel(x_ref, w1_ref, wp_ref, b_ref, o_ref):
    f32 = jnp.float32
    n_c1 = w1_ref.shape[1]          # 576 = 4 quadrants * (3*3*16)
    n_pool = n_c1 // 4              # 144 = 3*3*16
    r2 = n_pool                     # row offsets inside the packed weight slab
    r3 = r2 + 128
    r4 = r3 + 128
    r5 = r4 + 128

    # conv1 + ReLU as one packed MXU matmul; output lanes are grouped by pool
    # quadrant: lane = quad*144 + (pool_row*3 + pool_col)*16 + channel.
    c1 = jnp.maximum(
        jnp.dot(x_ref[...], w1_ref[...], preferred_element_type=f32)
        + b_ref[0:1, :], 0.0)                                        # (bt, 576)

    # 2x2 / stride-2 max-pool == 3 elementwise maxima over the 4 quadrant blocks.
    pooled = jnp.maximum(
        jnp.maximum(c1[:, 0 * n_pool:1 * n_pool], c1[:, 1 * n_pool:2 * n_pool]),
        jnp.maximum(c1[:, 2 * n_pool:3 * n_pool], c1[:, 3 * n_pool:4 * n_pool]))

    # conv2 + ReLU: one block-packed matmul yields all 4 output positions.
    c2 = jnp.maximum(
        jnp.dot(pooled, wp_ref[0:r2, :], preferred_element_type=f32)
        + b_ref[1:2, 0:128], 0.0)                                    # (bt, 128)

    # conv3 + ReLU: packed matmul; lanes 64:128 stay exactly 0 (padded embedding).
    emb = jnp.maximum(
        jnp.dot(c2, wp_ref[r2:r3, :], preferred_element_type=f32)
        + b_ref[2:3, 0:128], 0.0)                                    # (bt, 128)

    # Fused actor+critic first layers (zero weight rows absorb emb's padding).
    h = jnp.tanh(
        jnp.dot(emb, wp_ref[r3:r4, :], preferred_element_type=f32)
        + b_ref[3:4, 0:128])                                         # (bt, 128)

    # Fused second layers: lanes [0:na) actor logits, lane na value, rest 0.
    out = (jnp.dot(h, wp_ref[r4:r5, :], preferred_element_type=f32)
           + b_ref[4:5, 0:128])                                      # (bt, 128)

    # Log-softmax on the logit lanes only, via the precomputed 0/1 lane mask.
    mask = b_ref[5:6, 0:128]                     # (1, 128)
    z = out + (mask - 1.0) * 1e30                # non-logit lanes -> ~-1e30
    m = jnp.max(z, axis=-1, keepdims=True)
    lse = m + jnp.log(jnp.sum(jnp.exp(z - m), axis=-1, keepdims=True))
    o_ref[...] = out - lse * mask                # single unmasked 128-lane store


# ----------------------------------------------------------------------------
# Wrapper
# ----------------------------------------------------------------------------
def pnn_column_forward(prep, image, memory, *, n_actions, batch_tile=None):
    """image: (B, H, W, 3) float32 (= obs.image before PyTorch's NCHW transpose).
    Returns (dist_log_probs, value, memory) — the Categorical distribution is
    represented by its log-softmax logits."""
    na = prep.get("n_actions", n_actions)
    if isinstance(na, int):           # only checkable when prep is not traced
        assert na == n_actions, "prep was packed for a different n_actions"

    B = image.shape[0]
    x = image.reshape(B, -1).astype(jnp.float32)     # (B, 147) — layout plumbing only

    if batch_tile is None:
        batch_tile = B if B <= 256 else 256
    n_blk = pl.cdiv(B, batch_tile)
    Bp = n_blk * batch_tile
    if Bp != B:
        x = jnp.pad(x, ((0, Bp - B), (0, 0)))

    w1p, wpack, bias = prep["w1p"], prep["wpack"], prep["bias"]
    out = pl.pallas_call(
        _fused_pnn_kernel,
        out_shape=jax.ShapeDtypeStruct((Bp, OUT_LANES), jnp.float32),
        grid=(n_blk,),
        in_specs=[
            pl.BlockSpec((batch_tile, x.shape[1]), lambda i: (i, 0)),
            pl.BlockSpec(w1p.shape, lambda i: (0, 0)),
            pl.BlockSpec(wpack.shape, lambda i: (0, 0)),
            pl.BlockSpec(bias.shape, lambda i: (0, 0)),
        ],
        out_specs=pl.BlockSpec((batch_tile, OUT_LANES), lambda i: (i, 0)),
        compiler_params=pltpu.CompilerParams(
            # batch tiles are independent -> shards across v7x's two TensorCores
            dimension_semantics=("parallel",)),
    )(x, w1p, wpack, bias)

    log_probs = out[:B, :n_actions]
    value = out[:B, n_actions]
    # TODO(synk): use_memory / use_text branches (LSTMCell, Embedding+GRU) are
    # statically disabled in this configuration; memory passes through unchanged.
    return log_probs, value, memory


# ----------------------------------------------------------------------------
# One-time parameter packing (hoisted out of the hot path)
# ----------------------------------------------------------------------------
def prepare_params(params, n_actions):
    assert n_actions + 1 <= OUT_LANES

    def taps(w):  # (Cout, Cin, KH, KW) -> (KH, KW, Cin, Cout)
        return np.transpose(np.asarray(w, np.float32), (2, 3, 1, 0))

    w1 = taps(params["conv1_w"]); b1 = np.asarray(params["conv1_b"], np.float32)
    w2 = taps(params["conv2_w"]); b2 = np.asarray(params["conv2_b"], np.float32)
    w3 = taps(params["conv3_w"]); b3 = np.asarray(params["conv3_b"], np.float32)
    aw1 = np.asarray(params["actor_w1"], np.float32)
    ab1 = np.asarray(params["actor_b1"], np.float32)
    aw2 = np.asarray(params["actor_w2"], np.float32)
    ab2 = np.asarray(params["actor_b2"], np.float32)
    cw1 = np.asarray(params["critic_w1"], np.float32)
    cb1 = np.asarray(params["critic_b1"], np.float32)
    cw2 = np.asarray(params["critic_w2"], np.float32)
    cb2 = np.asarray(params["critic_b2"], np.float32)
    assert w1.shape == (2, 2, 3, 16) and w2.shape == (2, 2, 16, 32) and w3.shape == (2, 2, 32, 64)
    assert aw1.shape == (64, 64) and cw1.shape == (64, 64)
    assert aw2.shape == (64, n_actions) and cw2.shape == (64, 1)

    # conv1 packed weight (147, 576): row = (r*7+c)*3+ci,
    # col = (di*2+dj)*144 + (pi*3+pj)*16 + co, output pixel (i,j) = (2pi+di, 2pj+dj)
    W1P = np.zeros((7 * 7 * 3, 576), np.float32)
    B1 = np.zeros((576,), np.float32)
    for pi in range(3):
        for pj in range(3):
            for di in range(2):
                for dj in range(2):
                    i, j = 2 * pi + di, 2 * pj + dj
                    col0 = (di * 2 + dj) * 144 + (pi * 3 + pj) * 16
                    B1[col0:col0 + 16] = b1
                    for kh in range(2):
                        for kw in range(2):
                            row0 = ((i + kh) * 7 + (j + kw)) * 3
                            for ci in range(3):
                                W1P[row0 + ci, col0:col0 + 16] = w1[kh, kw, ci]

    # conv2 packed weight (144, 128): in lane (ph*3+pw)*16+ci -> out lane (oh*2+ow)*32+co
    W2P = np.zeros((144, 128), np.float32)
    B2 = np.zeros((128,), np.float32)
    for oh in range(2):
        for ow in range(2):
            oc0 = (oh * 2 + ow) * 32
            B2[oc0:oc0 + 32] = b2
            for kh in range(2):
                for kw in range(2):
                    ic0 = ((oh + kh) * 3 + (ow + kw)) * 16
                    W2P[ic0:ic0 + 16, oc0:oc0 + 32] = w2[kh, kw]

    # conv3 packed weight (128, 128): out lanes [0:64), rest zero-padded
    W3P = np.zeros((128, 128), np.float32)
    for kh in range(2):
        for kw in range(2):
            ic0 = (kh * 2 + kw) * 32
            W3P[ic0:ic0 + 32, 0:64] = w3[kh, kw]
    B3 = np.zeros((128,), np.float32); B3[:64] = b3

    # fused head weights
    WH1 = np.zeros((128, 128), np.float32)       # rows 64:128 zero (absorb emb padding)
    WH1[:64, :64] = aw1
    WH1[:64, 64:128] = cw1
    BH1 = np.zeros((128,), np.float32); BH1[:64] = ab1; BH1[64:128] = cb1
    WH2 = np.zeros((128, 128), np.float32)       # cols [0:na) logits, col na value
    WH2[:64, :n_actions] = aw2
    WH2[64:128, n_actions] = cw2[:, 0]
    BH2 = np.zeros((128,), np.float32)
    BH2[:n_actions] = ab2; BH2[n_actions] = cb2[0]

    mask = np.zeros((128,), np.float32); mask[:n_actions] = 1.0

    wpack = np.concatenate([W2P, W3P, WH1, WH2], axis=0)   # (528, 128)
    bias = np.zeros((8, 576), np.float32)                  # one DMA for all biases+mask
    bias[0, :] = B1
    bias[1, :128] = B2
    bias[2, :128] = B3
    bias[3, :128] = BH1
    bias[4, :128] = BH2
    bias[5, :128] = mask

    return {"w1p": jnp.asarray(W1P), "wpack": jnp.asarray(wpack),
            "bias": jnp.asarray(bias), "n_actions": int(n_actions)}


# ----------------------------------------------------------------------------
# Deterministic synthetic parameters (PyTorch layouts)
# ----------------------------------------------------------------------------
def make_params(key, n_actions, emb_size=64):
    ks = jax.random.split(key, 14)

    def w(k, shape, gain=1.0):
        fan_in = float(np.prod(shape[1:])) if len(shape) > 1 else float(shape[0])
        return (gain * jax.random.normal(k, shape, jnp.float32)
                / jnp.sqrt(fan_in)).astype(jnp.float32)

    g = float(np.sqrt(2.0))  # relu gain used by the PyTorch init_
    return {
        # conv weights kept in PyTorch layout (Cout, Cin, KH, KW); biases zero.
        "conv1_w": w(ks[0], (16, 3, 2, 2), g), "conv1_b": jnp.zeros((16,), jnp.float32),
        "conv2_w": w(ks[1], (32, 16, 2, 2), g), "conv2_b": jnp.zeros((32,), jnp.float32),
        "conv3_w": w(ks[2], (64, 32, 2, 2), g), "conv3_b": jnp.zeros((64,), jnp.float32),
        # linear weights stored as (in, out)
        "actor_w1": w(ks[3], (emb_size, 64)), "actor_b1": w(ks[4], (64,)) * 0.1,
        "actor_w2": w(ks[5], (64, n_actions)), "actor_b2": w(ks[6], (n_actions,)) * 0.1,
        "critic_w1": w(ks[7], (emb_size, 64)), "critic_b1": w(ks[8], (64,)) * 0.1,
        "critic_w2": w(ks[9], (64, 1)), "critic_b2": w(ks[10], (1,)) * 0.1,
    }


# ----------------------------------------------------------------------------
# Pure-JAX reference (verification only)
# ----------------------------------------------------------------------------
def ref_forward(params, image, memory):
    def conv(x, wt, b):
        wj = jnp.transpose(wt, (2, 3, 1, 0))  # HWIO
        y = jax.lax.conv_general_dilated(
            x, wj, (1, 1), "VALID", dimension_numbers=("NHWC", "HWIO", "NHWC"))
        return jax.nn.relu(y + b)

    x = conv(image, params["conv1_w"], params["conv1_b"])
    B, H, W, C = x.shape
    x = x.reshape(B, H // 2, 2, W // 2, 2, C).max(axis=(2, 4))
    x = conv(x, params["conv2_w"], params["conv2_b"])
    x = conv(x, params["conv3_w"], params["conv3_b"])
    emb = x.reshape(B, -1)

    def head(e, w1, b1, w2, b2):
        return jnp.tanh(e @ w1 + b1) @ w2 + b2

    logits = head(emb, params["actor_w1"], params["actor_b1"],
                  params["actor_w2"], params["actor_b2"])
    logp = jax.nn.log_softmax(logits, axis=1)
    value = head(emb, params["critic_w1"], params["critic_b1"],
                 params["critic_w2"], params["critic_b2"])[:, 0]
    return logp, value, memory


if __name__ == "__main__":
    B, H, W, C_IN = 2, 7, 7, 3      # obs_space['image'] = (7, 7, 3)
    N_ACTIONS = 7
    EMB = ((H - 1) // 2 - 2) * ((W - 1) // 2 - 2) * 64  # = 64

    key = jax.random.PRNGKey(0)
    k_img, k_par = jax.random.split(key)
    image = jax.random.uniform(k_img, (B, H, W, C_IN), jnp.float32)
    memory = jnp.zeros((B, 2 * EMB), jnp.float32)
    params = make_params(k_par, N_ACTIONS, EMB)
    prep = prepare_params(params, N_ACTIONS)   # one-time, outside the hot path

    fwd = jax.jit(functools.partial(pnn_column_forward, n_actions=N_ACTIONS))
    log_probs, value, mem_out = jax.block_until_ready(fwd(prep, image, memory))

    # verify against pure-JAX reference
    r_logp, r_val, _ = ref_forward(params, image, memory)
    assert log_probs.shape == (B, N_ACTIONS) and value.shape == (B,)
    np.testing.assert_allclose(np.asarray(log_probs), np.asarray(r_logp),
                               rtol=1e-4, atol=1e-4)
    np.testing.assert_allclose(np.asarray(value), np.asarray(r_val),
                               rtol=1e-4, atol=1e-4)
    np.testing.assert_allclose(np.asarray(mem_out), np.asarray(memory))

    print("KERNEL_OK")
</pallas_src>

<mosaic_0001>
module attributes {stable_mosaic.version = 11 : i64} {
  func.func @_fused_pnn_kernel(%arg0: i32, %arg1: memref<2x147xf32, #tpu.memory_space<vmem>>, %arg2: memref<147x576xf32, #tpu.memory_space<vmem>>, %arg3: memref<528x128xf32, #tpu.memory_space<vmem>>, %arg4: memref<8x576xf32, #tpu.memory_space<vmem>>, %arg5: memref<2x128xf32, #tpu.memory_space<vmem>>) attributes {dimension_semantics = [#tpu.dimension_semantics<parallel>], iteration_bounds = array<i64: 1>, scalar_prefetch = 0 : i64, scratch_operands = 0 : i64, tpu.core_type = #tpu.core_type<tc>, window_params = [{transform_indices = @transform_0, window_bounds = array<i64: 2, 147>}, {pipeline_mode = #tpu.pipeline_mode<synchronous>, transform_indices = @transform_1, window_bounds = array<i64: 147, 576>}, {pipeline_mode = #tpu.pipeline_mode<synchronous>, transform_indices = @transform_2, window_bounds = array<i64: 528, 128>}, {pipeline_mode = #tpu.pipeline_mode<synchronous>, transform_indices = @transform_3, window_bounds = array<i64: 8, 576>}, {transform_indices = @transform_4, window_bounds = array<i64: 2, 128>}]} {
    %c0 = arith.constant 0 : index
    %c0_0 = arith.constant 0 : index
    %0 = vector.load %arg1[%c0, %c0_0] : memref<2x147xf32, #tpu.memory_space<vmem>>, vector<2x147xf32>
    %c0_1 = arith.constant 0 : index
    %c0_2 = arith.constant 0 : index
    %1 = vector.load %arg2[%c0_1, %c0_2] : memref<147x576xf32, #tpu.memory_space<vmem>>, vector<147x576xf32>
    %cst = arith.constant dense<0.000000e+00> : vector<2x576xf32>
    %2 = tpu.matmul %0, %1, %cst {dimension_numbers = #tpu.dot_dimension_numbers<[1], [0], [0], [1], [0, 0, 1, 1], [], []>} : vector<2x147xf32>, vector<147x576xf32>, vector<2x576xf32> -> vector<2x576xf32>
    %c0_3 = arith.constant 0 : index
    %c0_4 = arith.constant 0 : index
    %3 = vector.load %arg4[%c0_3, %c0_4] : memref<8x576xf32, #tpu.memory_space<vmem>>, vector<1x576xf32>
    %4 = vector.broadcast %3 : vector<1x576xf32> to vector<2x576xf32>
    %5 = arith.addf %2, %4 : vector<2x576xf32>
    %cst_5 = arith.constant 0.000000e+00 : f32
    %6 = vector.broadcast %cst_5 : f32 to vector<2x576xf32>
    %7 = arith.maximumf %5, %6 : vector<2x576xf32>
    %8 = vector.extract_strided_slice %7 {offsets = [0, 0], sizes = [2, 144], strides = [1, 1]} : vector<2x576xf32> to vector<2x144xf32>
    %9 = vector.extract_strided_slice %7 {offsets = [0, 144], sizes = [2, 144], strides = [1, 1]} : vector<2x576xf32> to vector<2x144xf32>
    %10 = arith.maximumf %8, %9 : vector<2x144xf32>
    %11 = vector.extract_strided_slice %7 {offsets = [0, 288], sizes = [2, 144], strides = [1, 1]} : vector<2x576xf32> to vector<2x144xf32>
    %12 = vector.extract_strided_slice %7 {offsets = [0, 432], sizes = [2, 144], strides = [1, 1]} : vector<2x576xf32> to vector<2x144xf32>
    %13 = arith.maximumf %11, %12 : vector<2x144xf32>
    %14 = arith.maximumf %10, %13 : vector<2x144xf32>
    %c0_6 = arith.constant 0 : index
    %c0_7 = arith.constant 0 : index
    %15 = vector.load %arg3[%c0_6, %c0_7] : memref<528x128xf32, #tpu.memory_space<vmem>>, vector<144x128xf32>
    %cst_8 = arith.constant dense<0.000000e+00> : vector<2x128xf32>
    %16 = tpu.matmul %14, %15, %cst_8 {dimension_numbers = #tpu.dot_dimension_numbers<[1], [0], [0], [1], [0, 0, 1, 1], [], []>} : vector<2x144xf32>, vector<144x128xf32>, vector<2x128xf32> -> vector<2x128xf32>
    %c1 = arith.constant 1 : index
    %c0_9 = arith.constant 0 : index
    %17 = vector.load %arg4[%c1, %c0_9] : memref<8x576xf32, #tpu.memory_space<vmem>>, vector<1x128xf32>
    %18 = vector.broadcast %17 : vector<1x128xf32> to vector<2x128xf32>
    %19 = arith.addf %16, %18 : vector<2x128xf32>
    %cst_10 = arith.constant 0.000000e+00 : f32
    %20 = vector.broadcast %cst_10 : f32 to vector<2x128xf32>
    %21 = arith.maximumf %19, %20 : vector<2x128xf32>
    %c144 = arith.constant 144 : index
    %c0_11 = arith.constant 0 : index
    %22 = vector.load %arg3[%c144, %c0_11] : memref<528x128xf32, #tpu.memory_space<vmem>>, vector<128x128xf32>
    %cst_12 = arith.constant dense<0.000000e+00> : vector<2x128xf32>
    %23 = tpu.matmul %21, %22, %cst_12 {dimension_numbers = #tpu.dot_dimension_numbers<[1], [0], [0], [1], [0, 0, 1, 1], [], []>} : vector<2x128xf32>, vector<128x128xf32>, vector<2x128xf32> -> vector<2x128xf32>
    %c2 = arith.constant 2 : index
    %c0_13 = arith.constant 0 : index
    %24 = vector.load %arg4[%c2, %c0_13] : memref<8x576xf32, #tpu.memory_space<vmem>>, vector<1x128xf32>
    %25 = vector.broadcast %24 : vector<1x128xf32> to vector<2x128xf32>
    %26 = arith.addf %23, %25 : vector<2x128xf32>
    %cst_14 = arith.constant 0.000000e+00 : f32
    %27 = vector.broadcast %cst_14 : f32 to vector<2x128xf32>
    %28 = arith.maximumf %26, %27 : vector<2x128xf32>
    %c272 = arith.constant 272 : index
    %c0_15 = arith.constant 0 : index
    %29 = vector.load %arg3[%c272, %c0_15] : memref<528x128xf32, #tpu.memory_space<vmem>>, vector<128x128xf32>
    %cst_16 = arith.constant dense<0.000000e+00> : vector<2x128xf32>
    %30 = tpu.matmul %28, %29, %cst_16 {dimension_numbers = #tpu.dot_dimension_numbers<[1], [0], [0], [1], [0, 0, 1, 1], [], []>} : vector<2x128xf32>, vector<128x128xf32>, vector<2x128xf32> -> vector<2x128xf32>
    %c3 = arith.constant 3 : index
    %c0_17 = arith.constant 0 : index
    %31 = vector.load %arg4[%c3, %c0_17] : memref<8x576xf32, #tpu.memory_space<vmem>>, vector<1x128xf32>
    %32 = vector.broadcast %31 : vector<1x128xf32> to vector<2x128xf32>
    %33 = arith.addf %30, %32 : vector<2x128xf32>
    %34 = math.tanh %33 : vector<2x128xf32>
    %c400 = arith.constant 400 : index
    %c0_18 = arith.constant 0 : index
    %35 = vector.load %arg3[%c400, %c0_18] : memref<528x128xf32, #tpu.memory_space<vmem>>, vector<128x128xf32>
    %cst_19 = arith.constant dense<0.000000e+00> : vector<2x128xf32>
    %36 = tpu.matmul %34, %35, %cst_19 {dimension_numbers = #tpu.dot_dimension_numbers<[1], [0], [0], [1], [0, 0, 1, 1], [], []>} : vector<2x128xf32>, vector<128x128xf32>, vector<2x128xf32> -> vector<2x128xf32>
    %c4 = arith.constant 4 : index
    %c0_20 = arith.constant 0 : index
    %37 = vector.load %arg4[%c4, %c0_20] : memref<8x576xf32, #tpu.memory_space<vmem>>, vector<1x128xf32>
    %38 = vector.broadcast %37 : vector<1x128xf32> to vector<2x128xf32>
    %39 = arith.addf %36, %38 : vector<2x128xf32>
    %c5 = arith.constant 5 : index
    %c0_21 = arith.constant 0 : index
    %40 = vector.load %arg4[%c5, %c0_21] : memref<8x576xf32, #tpu.memory_space<vmem>>, vector<1x128xf32>
    %cst_22 = arith.constant 1.000000e+00 : f32
    %41 = vector.broadcast %cst_22 : f32 to vector<1x128xf32>
    %42 = arith.subf %40, %41 : vector<1x128xf32>
    %cst_23 = arith.constant 1.000000e+30 : f32
    %43 = vector.broadcast %cst_23 : f32 to vector<1x128xf32>
    %44 = arith.mulf %42, %43 : vector<1x128xf32>
    %45 = vector.broadcast %44 : vector<1x128xf32> to vector<2x128xf32>
    %46 = arith.addf %39, %45 : vector<2x128xf32>
    %cst_24 = arith.constant dense<0xFF800000> : vector<2xf32>
    %47 = vector.multi_reduction <maximumf>, %46, %cst_24 [1] : vector<2x128xf32> to vector<2xf32>
    %48 = vector.shape_cast %47 : vector<2xf32> to vector<2x1xf32>
    %49 = vector.broadcast %48 : vector<2x1xf32> to vector<2x128xf32>
    %50 = arith.subf %46, %49 : vector<2x128xf32>
    %51 = math.exp %50 : vector<2x128xf32>
    %cst_25 = arith.constant dense<0.000000e+00> : vector<2xf32>
    %52 = vector.multi_reduction <add>, %51, %cst_25 [1] : vector<2x128xf32> to vector<2xf32>
    %53 = vector.shape_cast %52 : vector<2xf32> to vector<2x1xf32>
    %54 = math.log %53 : vector<2x1xf32>
    %55 = arith.addf %48, %54 : vector<2x1xf32>
    %56 = vector.broadcast %55 : vector<2x1xf32> to vector<2x128xf32>
    %57 = vector.broadcast %40 : vector<1x128xf32> to vector<2x128xf32>
    %58 = arith.mulf %56, %57 : vector<2x128xf32>
    %59 = arith.subf %39, %58 : vector<2x128xf32>
    %c0_26 = arith.constant 0 : index
    %c0_27 = arith.constant 0 : index
    %60 = vector.load %arg5[%c0_26, %c0_27] : memref<2x128xf32, #tpu.memory_space<vmem>>, vector<2x128xf32>
    tpu.vector_store %arg5[%c0_26, %c0_27], %59 {strides = array<i32>} : memref<2x128xf32, #tpu.memory_space<vmem>>, vector<2x128xf32>,
    return
  }
  func.func @transform_0(%arg0: i32) -> (i32, i32) {
    %c0_i32 = arith.constant 0 : i32
    %c0_i32_0 = arith.constant 0 : i32
    return %arg0, %c0_i32 : i32, i32
  }
  func.func @transform_1(%arg0: i32) -> (i32, i32) {
    %c0_i32 = arith.constant 0 : i32
    %c0_i32_0 = arith.constant 0 : i32
    %c0_i32_1 = arith.constant 0 : i32
    return %c0_i32, %c0_i32_0 : i32, i32
  }
  func.func @transform_2(%arg0: i32) -> (i32, i32) {
    %c0_i32 = arith.constant 0 : i32
    %c0_i32_0 = arith.constant 0 : i32
    %c0_i32_1 = arith.constant 0 : i32
    return %c0_i32, %c0_i32_0 : i32, i32
  }
  func.func @transform_3(%arg0: i32) -> (i32, i32) {
    %c0_i32 = arith.constant 0 : i32
    %c0_i32_0 = arith.constant 0 : i32
    %c0_i32_1 = arith.constant 0 : i32
    return %c0_i32, %c0_i32_0 : i32, i32
  }
  func.func @transform_4(%arg0: i32) -> (i32, i32) {
    %c0_i32 = arith.constant 0 : i32
    %c0_i32_0 = arith.constant 0 : i32
    return %arg0, %c0_i32 : i32, i32
  }
}

</mosaic_0001>

<bundles_post_ra>
// kernel: pnn_column_forward.1
= control target key start
LH: loop header
LB: loop body
LE: loop exit
PB: predicated region body
PF: predicated region fallthrough
CT: control target
= control target key end

     0   :  { %9 = vsyncpa [#allocation3], 0  ;;  %s1453_s0 = inlined_call_operand.vmem [shape: f32[2,147], index: 0, kind: input, shape index: {}]   ;;  %s1454_s1 = inlined_call_operand.hbm [shape: f32[147,576], index: 1, kind: input, shape index: {}]   ;;  %s1455_s2 = inlined_call_operand.hbm [shape: f32[528,128], index: 2, kind: input, shape index: {}]   ;;  %s1456_s3 = inlined_call_operand.vmem [shape: f32[8,576], index: 3, kind: input, shape index: {}]   ;;  %s1457_s4 = inlined_call_operand.vmem [shape: f32[2,128], index: 4, kind: output, shape index: {}]  }
   0x1   :  { %10 = vsyncpa [#allocation5], 0  ;;  %s1264_s15 = smov [#allocation2]   ;;  %s1216_s19 = scalar_lea.hbm %s1454_s1, 12160 }
   0x2   :  { %s18_s16 = sshll.u32 %s1264_s15, 4  ;;  %p1217_p0 = scmp.ne.s32.totalorder %s1454_s1, %s1216_s19  ;;  %s19_s16 = int_to_ptr.vmem [resolvable:$true] %s18_s16 }
   0x3   :  { %p1220_p1 = scmp.lt.u32.totalorder %s1216_s19, %s1454_s1 }
   0x5   :  { %p1222_p2 = pnand %p1220_p1, %p1217_p0 }
   0x7   :  { %1225 = shalt.err (!%p1222_p2)
}
   0x8   :  { %s1226_s24 = scalar_lea.vmem %s19_s16, 12160  ;;  %p1231_p4 = scmp.lt.s32.totalorder %s19_s16, %s19_s16 }
   0x9   :  { %p1227_p3 = scmp.ne.s32.totalorder %s19_s16, %s1226_s24  ;;  %p1232_p5 = scmp.lt.s32.totalorder %s1226_s24, %s1226_s24 }
   0xb   :  { %p1233_p6 = por %p1232_p5, %p1231_p4 }
   0xd   :  { %p1234_p7 = pnand %p1233_p6, %p1227_p3 }
   0xf   :  { %1237 = shalt.err (!%p1234_p7)
}
  0x10   :  { %s1265_s25 = smov 640   ;;  %s1266_s26 = smov 40  }
  0x11   :  { %24 = dma.hbm_to_vmem [thread:$0]  %s1454_s1, 12160, %s19_s16, [#allocation3], %s1265_s25, %s1265_s25, %s1266_s26  }
  0x12   :  { %s1267_s29 = smov [#allocation4]   ;;  %s1238_s7 = scalar_lea.hbm %s1455_s2, 8448 }
  0x13   :  { %s30_s30 = sshll.u32 %s1267_s29, 4  ;;  %p1239_p8 = scmp.ne.s32.totalorder %s1455_s2, %s1238_s7  ;;  %s31_s30 = int_to_ptr.vmem [resolvable:$true] %s30_s30 }
  0x14   :  { %p1242_p9 = scmp.lt.u32.totalorder %s1238_s7, %s1455_s2 }
  0x16   :  { %p1244_p10 = pnand %p1242_p9, %p1239_p8 }
  0x18   :  { %1247 = shalt.err (!%p1244_p10)
}
  0x19   :  { %s1248_s12 = scalar_lea.vmem %s31_s30, 8448  ;;  %p1253_p12 = scmp.lt.s32.totalorder %s31_s30, %s31_s30 }
  0x1a   :  { %p1249_p11 = scmp.ne.s32.totalorder %s31_s30, %s1248_s12  ;;  %p1254_p13 = scmp.lt.s32.totalorder %s1248_s12, %s1248_s12 }
  0x1c   :  { %p1255_p0 = por %p1254_p13, %p1253_p12 }
  0x1e   :  { %p1256_p1 = pnand %p1255_p0, %p1249_p11 }
  0x20   :  { %1259 = shalt.err (!%p1256_p1)
}
  0x21   :  { %s1268_s1 = smov 128   ;;  %s1269_s13 = smov 8  }
  0x22   :  { %36 = dma.hbm_to_vmem [thread:$0]  %s1455_s2, 8448, %s31_s30, [#allocation5], %s1268_s1, %s1268_s1, %s1269_s13  }
  0x23   :  { %1260 = dma.done.wait [#allocation3], 12160  }
  0x24   :  { %1261 = vsyncadd [#allocation3], 4294955136 }
  0x25   :  { %1262 = dma.done.wait [#allocation5], 8448  }
  0x26   :  { %1263 = vsyncadd [#allocation5], 4294958848  ;;  %v47_v0 = vld [vmem:[#allocation2 + $0x8] sm:$0xff]  ;;  %v52_v1 = vld [vmem:[#allocation2 + $0x30] sm:$0xff]  ;;  %vm180_vm0 = vcmask 154624   ;;  %vm183_vm1 = vcmask 1042432  }
  0x27   :  { %v46_v2 = vld [vmem:[#allocation2] sm:$0xff]  ;;  %v1001_v3 = vpack.c.bf16 %v52_v1, %v47_v0  ;;  %v51_v4 = vld [vmem:[#allocation2 + $0x28] sm:$0xff]  ;;  %v57_v5 = vld [vmem:[#allocation2 + $0x58] sm:$0xff]  ;;  %s1272_s20 = smov 112   ;;  %vm422_vm2 = vcmask 916480   ;;  %s1273_s21 = smov 96  }
  0x28   :  { %v62_v6 = vld [vmem:[#allocation2 + $0x80] sm:$0xff]  ;;  %v1003_v7 = vpack.c.bf16 %v51_v4, %v46_v2  ;;  %v56_v9 = vld [vmem:[#allocation2 + $0x50] sm:$0xff]  ;;  %v61_v10 = vld [vmem:[#allocation2 + $0x78] sm:$0xff]  ;;  %vm445_vm3 = vcmask 785408   ;;  %vm470_vm4 = vcmask 130048   ;;  %vm1274_vm5 = vmmov 0  }
  0x29   :  { %v1005_v8 = vpack.c.bf16 %v62_v6, %v57_v5  ;;  %v49_v11 = vld [vmem:[#allocation2 + $0x18] sm:$0xff]  ;;  %1002 = vmatprep.subr.bf16.mxu0 %v1001_v3  ;;  %v54_v12 = vld [vmem:[#allocation2 + $0x40] sm:$0xff]  ;;  %v48_v13 = vld [vmem:[#allocation2 + $0x10] sm:$0xff]  ;;  %v1007_v15 = vpack.c.bf16 %v61_v10, %v56_v9  ;;  %vm812_vm6 = vcmask 1041408  }
  0x2a   :  { %v53_v14 = vld [vmem:[#allocation2 + $0x38] sm:$0xff]  ;;  %1004 = vmatpush1.bf16.msra.mxu0 %v1003_v7  ;;  %v1037_v16 = vpack.c.bf16 %v54_v12, %v49_v11  ;;  %v67_v18 = vld [vmem:[#allocation2 + $0xa8] sm:$0xff]  ;;  %v72_v19 = vld [vmem:[#allocation2 + $0xd0] sm:$0xff] }
  0x2b   :  { %v1039_v17 = vpack.c.bf16 %v53_v14, %v48_v13  ;;  %v66_v20 = vld [vmem:[#allocation2 + $0xa0] sm:$0xff]  ;;  %1006 = vmatprep.subr.bf16.mxu0 %v1005_v8  ;;  %v1009_v21 = vpack.c.bf16 %v72_v19, %v67_v18  ;;  %v71_v22 = vld [vmem:[#allocation2 + $0xc8] sm:$0xff]  ;;  %v64_v24 = vld [vmem:[#allocation2 + $0x90] sm:$0xff] }
  0x2c   :  { %v59_v23 = vld [vmem:[#allocation2 + $0x68] sm:$0xff]  ;;  %1038 = vmatprep.subr.bf16.mxu1 %v1037_v16  ;;  %v58_v26 = vld [vmem:[#allocation2 + $0x60] sm:$0xff]  ;;  %v77_v28 = vld [vmem:[#allocation2 + $0xf8] sm:$0xff]  ;;  %v1011_v31 = vpack.c.bf16 %v71_v22, %v66_v20 }
  0x2d   :  { %v1041_v25 = vpack.c.bf16 %v64_v24, %v59_v23  ;;  %v63_v27 = vld [vmem:[#allocation2 + $0x88] sm:$0xff]  ;;  %1040 = vmatpush1.bf16.msra.mxu1 %v1039_v17  ;;  %v82_v30 = vld [vmem:[#allocation2 + $0x120] sm:$0xff]  ;;  %v69_v32 = vld [vmem:[#allocation2 + $0xb8] sm:$0xff] }
  0x2e   :  { %v1043_v29 = vpack.c.bf16 %v63_v27, %v58_v26  ;;  %1008 = vmatpush1.bf16.msra.mxu0 %v1007_v15  ;;  %v74_v33 = vld [vmem:[#allocation2 + $0xe0] sm:$0xff]  ;;  %v68_v34 = vld [vmem:[#allocation2 + $0xb0] sm:$0xff]  ;;  %v1013_v35 = vpack.c.bf16 %v82_v30, %v77_v28  ;;  %v81_v37 = vld [vmem:[#allocation2 + $0x118] sm:$0xff] }
  0x2f   :  { %1042 = vmatprep.subr.bf16.mxu1 %v1041_v25  ;;  %1010 = vmatprep.subr.bf16.mxu0 %v1009_v21  ;;  %v76_v36 = vld [vmem:[#allocation2 + $0xf0] sm:$0xff]  ;;  %v1045_v38 = vpack.c.bf16 %v74_v33, %v69_v32  ;;  %v73_v39 = vld [vmem:[#allocation2 + $0xd8] sm:$0xff]  ;;  %v87_v40 = vld [vmem:[#allocation2 + $0x148] sm:$0xff] }
  0x30   :  { %v92_v41 = vld [vmem:[#allocation2 + $0x170] sm:$0xff]  ;;  %v79_v42 = vld [vmem:[#allocation2 + $0x108] sm:$0xff]  ;;  %v1047_v43 = vpack.c.bf16 %v73_v39, %v68_v34  ;;  %v1015_v45 = vpack.c.bf16 %v81_v37, %v76_v36  ;;  %v86_v46 = vld [vmem:[#allocation2 + $0x140] sm:$0xff] }
  0x31   :  { %1044 = vmatpush1.bf16.msra.mxu1 %v1043_v29  ;;  %v84_v44 = vld [vmem:[#allocation2 + $0x130] sm:$0xff]  ;;  %v78_v48 = vld [vmem:[#allocation2 + $0x100] sm:$0xff]  ;;  %v83_v49 = vld [vmem:[#allocation2 + $0x128] sm:$0xff]  ;;  %v1017_v50 = vpack.c.bf16 %v92_v41, %v87_v40 }
  0x32   :  { %1012 = vmatpush1.bf16.msra.mxu0 %v1011_v31  ;;  %1046 = vmatprep.subr.bf16.mxu1 %v1045_v38  ;;  %v1049_v47 = vpack.c.bf16 %v84_v44, %v79_v42  ;;  %v91_v51 = vld [vmem:[#allocation2 + $0x168] sm:$0xff]  ;;  %v89_v52 = vld [vmem:[#allocation2 + $0x158] sm:$0xff]  ;;  %v94_v53 = vld [vmem:[#allocation2 + $0x180] sm:$0xff]  ;;  %v1051_v56 = vpack.c.bf16 %v83_v49, %v78_v48 }
  0x33   :  { %1014 = vmatprep.subr.bf16.mxu0 %v1013_v35  ;;  %v97_v54 = vld [vmem:[#allocation2 + $0x198] sm:$0xff]  ;;  %v102_v55 = vld [vmem:[#allocation2 + $0x1c0] sm:$0xff]  ;;  %v1019_v57 = vpack.c.bf16 %v91_v51, %v86_v46  ;;  %v96_v58 = vld [vmem:[#allocation2 + $0x190] sm:$0xff]  ;;  %v1053_v59 = vpack.c.bf16 %v94_v53, %v89_v52 }
  0x34   :  { %v88_v60 = vld [vmem:[#allocation2 + $0x150] sm:$0xff]  ;;  %v93_v61 = vld [vmem:[#allocation2 + $0x178] sm:$0xff]  ;;  %v1021_v62 = vpack.c.bf16 %v102_v55, %v97_v54  ;;  %v99_v0 = vld [vmem:[#allocation2 + $0x1a8] sm:$0xff]  ;;  %v1270_v55 = vmov 0.0|0.0  }
  0x35   :  { %1048 = vmatpush1.bf16.msra.mxu1 %v1047_v43  ;;  %v101_v63 = vld [vmem:[#allocation2 + $0x1b8] sm:$0xff]  ;;  %v104_v1 = vld [vmem:[#allocation2 + $0x1d0] sm:$0xff]  ;;  %v107_v2 = vld [vmem:[#allocation2 + $0x1e8] sm:$0xff]  ;;  %v1055_v4 = vpack.c.bf16 %v93_v61, %v88_v60 }
  0x36   :  { %1016 = vmatpush1.bf16.msra.mxu0 %v1015_v45  ;;  %1050 = vmatprep.subr.bf16.mxu1 %v1049_v47  ;;  %v112_v3 = vld [vmem:[#allocation2 + $0x210] sm:$0xff]  ;;  %v1023_v5 = vpack.c.bf16 %v101_v63, %v96_v58  ;;  %v106_v6 = vld [vmem:[#allocation2 + $0x1e0] sm:$0xff]  ;;  %v1057_v7 = vpack.c.bf16 %v104_v1, %v99_v0  ;;  %v103_v9 = vld [vmem:[#allocation2 + $0x1c8] sm:$0xff] }
  0x37   :  { %1018 = vmatprep.subr.bf16.mxu0 %v1017_v50  ;;  %v98_v8 = vld [vmem:[#allocation2 + $0x1a0] sm:$0xff]  ;;  %v1025_v10 = vpack.c.bf16 %v112_v3, %v107_v2  ;;  %v111_v11 = vld [vmem:[#allocation2 + $0x208] sm:$0xff]  ;;  %v109_v12 = vld [vmem:[#allocation2 + $0x1f8] sm:$0xff] }
  0x38   :  { %v114_v13 = vld [vmem:[#allocation2 + $0x220] sm:$0xff]  ;;  %v117_v14 = vld [vmem:[#allocation2 + $0x238] sm:$0xff]  ;;  %v1059_v16 = vpack.c.bf16 %v103_v9, %v98_v8  ;;  %v1027_v18 = vpack.c.bf16 %v111_v11, %v106_v6  ;;  %v116_v19 = vld [vmem:[#allocation2 + $0x230] sm:$0xff] }
  0x39   :  { %1052 = vmatpush1.bf16.msra.mxu1 %v1051_v56  ;;  %v122_v15 = vld [vmem:[#allocation2 + $0x260] sm:$0xff]  ;;  %v1061_v20 = vpack.c.bf16 %v114_v13, %v109_v12  ;;  %v108_v21 = vld [vmem:[#allocation2 + $0x1f0] sm:$0xff]  ;;  %v113_v22 = vld [vmem:[#allocation2 + $0x218] sm:$0xff] }
  0x3a   :  { %1020 = vmatpush1.bf16.msra.mxu0 %v1019_v57  ;;  %1054 = vmatprep.subr.bf16.mxu1 %v1053_v59  ;;  %v1327_v17 = vld.sshfl [vmem:[%s1453_s0] sm:$0x33 pattern:$0x76325410]  ;;  %v1029_v24 = vpack.c.bf16 %v122_v15, %v117_v14  ;;  %v121_v25 = vld [vmem:[#allocation2 + $0x258] sm:$0xff]  ;;  %v119_v26 = vld [vmem:[#allocation2 + $0x248] sm:$0xff]  ;;  %v1063_v30 = vpack.c.bf16 %v113_v22, %v108_v21 }
  0x3b   :  { %1022 = vmatprep.subr.bf16.mxu0 %v1021_v62  ;;  %v178_v23 = vcombine.high %v1327_v17, %v1327_v17  ;;  %v124_v27 = vld [vmem:[#allocation2 + $0x270] sm:$0xff]  ;;  %v127_v28 = vld [vmem:[#allocation2 + $0x288] sm:$0xff]  ;;  %v1031_v31 = vpack.c.bf16 %v121_v25, %v116_v19  ;;  %v126_v32 = vld [vmem:[#allocation2 + $0x280] sm:$0xff]  ;;  %v1271_v14 = vmov 0.0  }
  0x3c   :  { %v132_v29 = vld [vmem:[#allocation2 + $0x2b0] sm:$0xff]  ;;  %v1065_v33 = vpack.c.bf16 %v124_v27, %v119_v26  ;;  %v118_v34 = vld [vmem:[#allocation2 + $0x240] sm:$0xff]  ;;  %v123_v35 = vld [vmem:[#allocation2 + $0x268] sm:$0xff] }
  0x3d   :  { %1056 = vmatpush1.bf16.msra.mxu1 %v1055_v4  ;;  %837 = vmatprep.mubr.msk.f32.mxu0 %vm180_vm0, %v178_v23  ;;  %v1033_v36 = vpack.c.bf16 %v132_v29, %v127_v28  ;;  %v131_v37 = vld [vmem:[#allocation2 + $0x2a8] sm:$0xff]  ;;  %v129_v38 = vld [vmem:[#allocation2 + $0x298] sm:$0xff]  ;;  %v134_v39 = vld [vmem:[#allocation2 + $0x2c0] sm:$0xff]  ;;  %v1067_v40 = vpack.c.bf16 %v123_v35, %v118_v34 }
  0x3e   :  { %1024 = vmatpush1.bf16.msra.mxu0 %v1023_v5  ;;  %1058 = vmatprep.subr.bf16.mxu1 %v1057_v7  ;;  %v1035_v41 = vpack.c.bf16 %v131_v37, %v126_v32  ;;  %v1069_v42 = vpack.c.bf16 %v134_v39, %v129_v38  ;;  %v128_v43 = vld [vmem:[#allocation2 + $0x290] sm:$0xff]  ;;  %v133_v44 = vld [vmem:[#allocation2 + $0x2b8] sm:$0xff]  ;;  %v50_v47 = vld [vmem:[#allocation2 + $0x20] sm:$0xff] }
  0x3f   :  { %1026 = vmatprep.subr.bf16.mxu0 %v1025_v10  ;;  %840 = vmatprep.mubr.msk.f32.mxu1 %vm180_vm0, %v178_v23  ;;  %v137_v45 = vld [vmem:[#allocation2 + $0x2d8] sm:$0x7]  ;;  %v1071_v46 = vpack.c.bf16 %v133_v44, %v128_v43  ;;  %v55_v48 = vld [vmem:[#allocation2 + $0x48] sm:$0xff]  ;;  %v136_v49 = vld [vmem:[#allocation2 + $0x2d0] sm:$0x7] }
  0x40   :  { %v139_v50 = vld [vmem:[#allocation2 + $0x2e8] sm:$0x7]  ;;  %v1074_v51 = vpack.c.bf16 %v55_v48, %v50_v47  ;;  %v60_v52 = vld [vmem:[#allocation2 + $0x70] sm:$0xff]  ;;  %v65_v53 = vld [vmem:[#allocation2 + $0x98] sm:$0xff] }
  0x41   :  { %1060 = vmatpush1.bf16.msra.mxu1 %v1059_v16  ;;  %v138_v54 = vld [vmem:[#allocation2 + $0x2e0] sm:$0x7]  ;;  %v1077_v56 = vpack.c.bf16 %v65_v53, %v60_v52  ;;  %v75_v58 = vld [vmem:[#allocation2 + $0xe8] sm:$0xff]  ;;  %v80_v60 = vld [vmem:[#allocation2 + $0x110] sm:$0xff]  ;;  %v145_v16 = vlaneseq }
  0x42   :  { %1028 = vmatpush1.bf16.msra.mxu0 %v1027_v18  ;;  %1062 = vmatprep.subr.bf16.mxu1 %v1061_v20  ;;  %v70_v57 = vld [vmem:[#allocation2 + $0xc0] sm:$0xff]  ;;  %v85_v61 = vld [vmem:[#allocation2 + $0x138] sm:$0xff]  ;;  %v95_v0 = vld [vmem:[#allocation2 + $0x188] sm:$0xff] }
  0x43   :  { %1030 = vmatprep.subr.bf16.mxu0 %v1029_v24  ;;  %v1080_v59 = vpack.c.bf16 %v75_v58, %v70_v57  ;;  %v1083_v62 = vpack.c.bf16 %v85_v61, %v80_v60  ;;  %v90_v63 = vld [vmem:[#allocation2 + $0x160] sm:$0xff]  ;;  %v100_v2 = vld [vmem:[#allocation2 + $0x1b0] sm:$0xff]  ;;  %v105_v3 = vld [vmem:[#allocation2 + $0x1d8] sm:$0xff]  ;;  %v1354_v18 = vshrl.u32 %v145_v16, 7 }
  0x44   :  { %v1086_v1 = vpack.c.bf16 %v95_v0, %v90_v63  ;;  %v1089_v4 = vpack.c.bf16 %v105_v3, %v100_v2  ;;  %v110_v5 = vld [vmem:[#allocation2 + $0x200] sm:$0xff]  ;;  %v115_v6 = vld [vmem:[#allocation2 + $0x228] sm:$0xff]  ;;  %v120_v8 = vld [vmem:[#allocation2 + $0x250] sm:$0xff] }
  0x45   :  { %1064 = vmatpush1.bf16.msra.mxu1 %v1063_v30  ;;  %v1092_v7 = vpack.c.bf16 %v115_v6, %v110_v5  ;;  %v125_v9 = vld [vmem:[#allocation2 + $0x278] sm:$0xff]  ;;  %v130_v11 = vld [vmem:[#allocation2 + $0x2a0] sm:$0xff]  ;;  %v135_v12 = vld [vmem:[#allocation2 + $0x2c8] sm:$0xff]  ;;  %v151_v22 = vsub.s32 1, %v1354_v18  ;;  %v163_v37 = vsub.s32 4, %v1354_v18 }
  0x46   :  { %1032 = vmatpush1.bf16.msra.mxu0 %v1031_v31  ;;  %1066 = vmatprep.subr.bf16.mxu1 %v1065_v33  ;;  %v1095_v10 = vpack.c.bf16 %v125_v9, %v120_v8  ;;  %v1098_v13 = vpack.c.bf16 %v135_v12, %v130_v11  ;;  %v140_v15 = vld [vmem:[#allocation2 + $0x2f0] sm:$0x7]  ;;  %v142_v20 = vld [vmem:[%s1456_s3] ss:$8 sm:$0x10]  ;;  %v451_v38 = vld [vmem:[#allocation4] sm:$0xff] }
  0x47   :  { %1034 = vmatprep.subr.bf16.mxu0 %v1033_v36  ;;  %v141_v19 = vld [vmem:[%s1456_s3] ss:$8 sm:$0xf] }
  0x48   :  { %v1362_v21 = vor.u32 %v142_v20, %v141_v19  ;;  %v452_v39 = vld [vmem:[#allocation4 + $0x8] sm:$0xff]  ;;  %v457_v52 = vld [vmem:[#allocation4 + $0x30] sm:$0xff]  ;;  %v458_v53 = vld [vmem:[#allocation4 + $0x38] sm:$0xff] }
  0x49   :  { %1068 = vmatpush1.bf16.msra.mxu1 %v1067_v40  ;;  %v453_v40 = vld [vmem:[#allocation4 + $0x10] sm:$0xff]  ;;  %v460_v57 = vld [vmem:[#allocation4 + $0x48] sm:$0xff]  ;;  %v462_v60 = vld [vmem:[#allocation4 + $0x58] sm:$0xff] }
  0x4a   :  { %1036 = vmatpush1.bf16.msra.mxu0 %v1035_v41  ;;  %1070 = vmatprep.subr.bf16.mxu1 %v1069_v42  ;;  %v152_v24 = vrot.slane %v1362_v21, %v151_v22  ;;  %v1101_v41 = vpack.c.bf16 %v452_v39, %v451_v38  ;;  %v454_v42 = vld [vmem:[#allocation4 + $0x18] sm:$0xff]  ;;  %v164_v43 = vrot.slane %v1362_v21, %v163_v37  ;;  %v464_v63 = vld [vmem:[#allocation4 + $0x68] sm:$0xff]  ;;  %v467_v12 = vld [vmem:[#allocation4 + $0x80] sm:$0xff] }
  0x4b   :  { %835 = vmatprep.subr.msk.mxu0 %vm183_vm1, %v137_v45  ;;  %v1104_v44 = vpack.c.bf16 %v454_v42, %v453_v40  ;;  %v455_v45 = vld [vmem:[#allocation4 + $0x20] sm:$0xff]  ;;  %v466_v2 = vld [vmem:[#allocation4 + $0x78] sm:$0xff]  ;;  %v552_v37 = vld [vmem:[#allocation4 + $0xc8] sm:$0xff] }
  0x4c   :  { %v553_v39 = vld [vmem:[#allocation4 + $0xd0] sm:$0xff]  ;;  %v554_v40 = vld [vmem:[#allocation4 + $0xd8] sm:$0xff]  ;;  %v555_v42 = vld [vmem:[#allocation4 + $0xe0] sm:$0xff] }
  0x4d   :  { %1072 = vmatpush1.bf16.msra.mxu1 %v1071_v46  ;;  %v456_v46 = vld [vmem:[#allocation4 + $0x28] sm:$0xff] }
  0x4e   :  { %836 = vmatpush1.msk.msra.mxu0 %vm183_vm1, %v136_v49  ;;  %838 = vmatprep.subr.msk.mxu1 %vm183_vm1, %v139_v50  ;;  %v1107_v50 = vpack.c.bf16 %v456_v46, %v455_v45  ;;  %v557_v45 = vld [vmem:[#allocation4 + $0xf0] sm:$0xff]  ;;  %v558_v46 = vld [vmem:[#allocation4 + $0xf8] sm:$0xff] }
  0x4f   :  { %264 = vmatmul.mubr.f32.vlgmr.msra.gmra.mrb[0].mxu0 %v1327_v17  ;;  %1073 = vmatprep.subr.bf16.mxu0 %v1270_v55 }
  0x50   :  { %1075 = vmatpush1.bf16.msra.mxu0 %v1074_v51  ;;  %842 = vmatprep.mubr.msk.f32.mxu0 %vm180_vm0, %v178_v23  ;;  %v155_v23 = vsub.s32 2, %v1354_v18 }
  0x51   :  { %839 = vmatpush1.msk.msra.mxu1 %vm183_vm1, %v138_v54  ;;  %1076 = vmatprep.subr.bf16.mxu0 %v1270_v55  ;;  %v1110_v54 = vpack.c.bf16 %v458_v53, %v457_v52  ;;  %v634_v52 = vld [vmem:[#allocation4 + $0x118] sm:$0xff]  ;;  %v635_v53 = vld [vmem:[#allocation4 + $0x120] sm:$0xff] }
  0x52   :  { %335 = vmatmul.mubr.f32.vlgmr.msra.gmra.mrb[0].mxu1 %v1327_v17  ;;  %1100 = vmatprep.subr.bf16.mxu1 %v1270_v55  ;;  %v156_v26 = vrot.slane %v1362_v21, %v155_v23  ;;  %v545_v23 = vld [vmem:[#allocation4 + $0x90] sm:$0xff] }
  0x53   :  { %1102 = vmatpush1.bf16.msra.mxu1 %v1101_v41  ;;  %v1140_v41 = vpack.c.bf16 %v554_v40, %v553_v39  ;;  %v733_v40 = vld [vmem:[#allocation4 + $0x1f0] sm:$0xff] }
  0x54   :  { %1078 = vmatpush1.bf16.msra.mxu0 %v1077_v56  ;;  %1103 = vmatprep.subr.bf16.mxu1 %v1270_v55  ;;  %v459_v56 = vld [vmem:[#allocation4 + $0x40] sm:$0xff] }
  0x55   :  { %1079 = vmatprep.subr.bf16.mxu0 %v1270_v55  ;;  %v1113_v58 = vpack.c.bf16 %v460_v57, %v459_v56  ;;  %v636_v56 = vld [vmem:[#allocation4 + $0x128] sm:$0xff] }
  0x56   :  { %v1155_v57 = vpack.c.bf16 %v636_v56, %v635_v53 }
  0x57   :  { %1105 = vmatpush1.bf16.msra.mxu1 %v1104_v44 }
  0x58   :  { %1081 = vmatpush1.bf16.msra.mxu0 %v1080_v59  ;;  %1106 = vmatprep.subr.bf16.mxu1 %v1270_v55  ;;  %v461_v59 = vld [vmem:[#allocation4 + $0x50] sm:$0xff] }
  0x59   :  { %1082 = vmatprep.subr.bf16.mxu0 %v1270_v55  ;;  %v1116_v61 = vpack.c.bf16 %v462_v60, %v461_v59  ;;  %v638_v59 = vld [vmem:[#allocation4 + $0x138] sm:$0xff] }
  0x5b   :  { %1108 = vmatpush1.bf16.msra.mxu1 %v1107_v50 }
  0x5c   :  { %1084 = vmatpush1.bf16.msra.mxu0 %v1083_v62  ;;  %1109 = vmatprep.subr.bf16.mxu1 %v1270_v55  ;;  %v463_v62 = vld [vmem:[#allocation4 + $0x60] sm:$0xff] }
  0x5d   :  { %1085 = vmatprep.subr.bf16.mxu0 %v1270_v55  ;;  %v1119_v0 = vpack.c.bf16 %v464_v63, %v463_v62  ;;  %v640_v62 = vld [vmem:[#allocation4 + $0x148] sm:$0xff] }
  0x5f   :  { %1111 = vmatpush1.bf16.msra.mxu1 %v1110_v54 }
  0x60   :  { %1087 = vmatpush1.bf16.msra.mxu0 %v1086_v1  ;;  %1112 = vmatprep.subr.bf16.mxu1 %v1270_v55  ;;  %v465_v1 = vld [vmem:[#allocation4 + $0x70] sm:$0xff] }
  0x61   :  { %1088 = vmatprep.subr.bf16.mxu0 %v1270_v55  ;;  %v1122_v3 = vpack.c.bf16 %v466_v2, %v465_v1  ;;  %v642_v1 = vld [vmem:[#allocation4 + $0x158] sm:$0xff] }
  0x63   :  { %1114 = vmatpush1.bf16.msra.mxu1 %v1113_v58  ;;  %v637_v58 = vld [vmem:[#allocation4 + $0x130] sm:$0xff] }
  0x64   :  { %1090 = vmatpush1.bf16.msra.mxu0 %v1089_v4  ;;  %1115 = vmatprep.subr.bf16.mxu1 %v1270_v55  ;;  %v147_v4 = vsub.s32 0, %v1354_v18  ;;  %v1158_v60 = vpack.c.bf16 %v638_v59, %v637_v58 }
  0x65   :  { %1091 = vmatprep.subr.bf16.mxu0 %v1270_v55 }
  0x66   :  { %v148_v5 = vrot.slane %v1362_v21, %v147_v4  ;;  %v644_v4 = vld [vmem:[#allocation4 + $0x168] sm:$0xff] }
  0x67   :  { %1117 = vmatpush1.bf16.msra.mxu1 %v1116_v61  ;;  %v639_v61 = vld [vmem:[#allocation4 + $0x140] sm:$0xff] }
  0x68   :  { %1093 = vmatpush1.bf16.msra.mxu0 %v1092_v7  ;;  %1118 = vmatprep.subr.bf16.mxu1 %v1270_v55  ;;  %v1161_v63 = vpack.c.bf16 %v640_v62, %v639_v61 }
  0x69   :  { %1094 = vmatprep.subr.bf16.mxu0 %v1270_v55 }
  0x6b   :  { %1120 = vmatpush1.bf16.msra.mxu1 %v1119_v0  ;;  %v641_v0 = vld [vmem:[#allocation4 + $0x150] sm:$0xff] }
  0x6c   :  { %1096 = vmatpush1.bf16.msra.mxu0 %v1095_v10  ;;  %1121 = vmatprep.subr.bf16.mxu1 %v1270_v55  ;;  %v1164_v2 = vpack.c.bf16 %v642_v1, %v641_v0 }
  0x6d   :  { %1097 = vmatprep.subr.bf16.mxu0 %v1270_v55 }
  0x6f   :  { %1123 = vmatpush1.bf16.msra.mxu1 %v1122_v3  ;;  %v643_v3 = vld [vmem:[#allocation4 + $0x160] sm:$0xff] }
  0x70   :  { %1099 = vmatpush1.bf16.msra.mxu0 %v1098_v13  ;;  %1124 = vmatprep.subr.bf16.mxu1 %v1270_v55  ;;  %v468_v13 = vld [vmem:[#allocation4 + $0x88] sm:$0xff] }
  0x71   :  { %377 = vmatprep.subr.mxu0 %v1271_v14 }
  0x74   :  { %841 = vmatpush1.msk.msra.mxu0 %vm183_vm1, %v140_v15  ;;  %v1125_v15 = vpack.c.bf16 %v468_v13, %v467_v12 }
  0x75   :  { %406 = vmatmul.mubr.f32.vlgmr.msra.gmra.mrb[2].mxu0 %v1327_v17  ;;  %1151 = vmatprep.subr.bf16.mxu0 %v1270_v55  ;;  %v159_v17 = vsub.s32 3, %v1354_v18 }
  0x76   :  { %1126 = vmatpush1.bf16.msra.mxu1 %v1125_v15  ;;  %963 = vmatprep.mubr.msk.f32.mxu0 %vm1274_vm5, %v1271_v14  ;;  %v647_v15 = vld [vmem:[#allocation4 + $0x180] sm:$0xff] }
  0x77   :  { %v160_v28 = vrot.slane %v1362_v21, %v159_v17  ;;  %1127 = vmatprep.subr.bf16.mxu1 %v1270_v55  ;;  %v546_v17 = vld [vmem:[#allocation4 + $0x98] sm:$0xff] }
 0x122   :  { %v1368_v25 = vpop.f32.mrb[0].mxu0 }
 0x123   :  { %v267_v27 = vpop.f32.mrb[1].mxu0  ;;  %v266_v6 = vadd.f32 %v1368_v25, %v148_v5  ;;  %v1167_v5 = vpack.c.bf16 %v644_v4, %v643_v3 }
 0x124   :  { %v1372_v29 = vadd.f32 %v267_v27, %v152_v24 }
 0x125   :  { %v336_v30 = vpop.f32.mrb[0].mxu1  ;;  %v411_v8 = vmax.f32 %v266_v6, 0.0  ;;  %v645_v6 = vld [vmem:[#allocation4 + $0x170] sm:$0xff] }
 0x126   :  { %v412_v31 = vmax.f32 %v1372_v29, 0.0  ;;  %v1375_v32 = vadd.f32 %v336_v30, %v156_v26  ;;  %v338_v33 = vpop.f32.mrb[1].mxu1  ;;  %v549_v29 = vld [vmem:[#allocation4 + $0xb0] sm:$0xff] }
 0x127   :  { %v1377_v34 = vadd.f32 %v338_v33, %v160_v28  ;;  %v1128_v28 = vpack.c.bf16 %v546_v17, %v545_v23  ;;  %v547_v33 = vld [vmem:[#allocation4 + $0xa0] sm:$0xff]  ;;  %v724_v23 = vld [vmem:[#allocation4 + $0x1a8] sm:$0xff] }
 0x128   :  { %v413_v35 = vmax.f32 %v1375_v32, 0.0  ;;  %418 = vrot.lane.b32.xlu1 %v412_v31, %s1272_s20  ;;  %v548_v32 = vld [vmem:[#allocation4 + $0xa8] sm:$0xff] }
 0x129   :  { %v414_v36 = vmax.f32 %v1377_v34, 0.0  ;;  %v1131_v34 = vpack.c.bf16 %v548_v32, %v547_v33  ;;  %v730_v33 = vld [vmem:[#allocation4 + $0x1d8] sm:$0xff] }
 0x12b   :  { %430 = vrot.lane.b32.xlu0 %v414_v36, %s1272_s20 }
 0x12c   :  { %420 = vrot.lane.b32.xlu1 %v413_v35, %s1272_s20 }
 0x148   :  { %v407_v47 = vpop.f32.mrb[2].mxu0 }
 0x149   :  { %v408_v48 = vadd.f32 %v407_v47, %v164_v43  ;;  %v409_v49 = vpop.f32.mrb[3].mxu0  ;;  %v556_v43 = vld [vmem:[#allocation4 + $0xe8] sm:$0xff]  ;;  %v1146_v47 = vpack.c.bf16 %v558_v46, %v557_v45 }
 0x14a   :  { %v1143_v44 = vpack.c.bf16 %v556_v43, %v555_v42  ;;  %v560_v49 = vld [vmem:[#allocation4 + $0x108] sm:$0xff]  ;;  %v735_v43 = vld [vmem:[#allocation4 + $0x200] sm:$0xff] }
 0x14b   :  { %v415_v51 = vmax.f32 %v408_v48, 0.0  ;;  %v559_v48 = vld [vmem:[#allocation4 + $0x100] sm:$0xff]  ;;  %v649_v46 = vld [vmem:[%s1456_s3 + $0x3] ss:$0 sm:$0xff] }
 0x14c   :  { %v1149_v50 = vpack.c.bf16 %v560_v49, %v559_v48 }
 0x14d   :  { %432 = vrot.lane.b32.xlu0 %v415_v51, %s1272_s20  ;;  %v633_v51 = vld [vmem:[#allocation4 + $0x110] sm:$0xff] }
 0x14e   :  { %v1152_v54 = vpack.c.bf16 %v634_v52, %v633_v51  ;;  %v808_v51 = vld [vmem:[%s1456_s3 + $0x5] ss:$0 sm:$0xff] }
 0x14f   :  { %v844_v52 = vadd.f32 -1.0, %v808_v51 }
 0x150   :  { %1153 = vmatpush3.bf16.msra.mxu0 %v1152_v54 }
 0x151   :  { %1154 = vmatprep.subr.bf16.mxu0 %v1270_v55  ;;  %v810_v53 = vmul.f32 1e+30, %v844_v52 }
 0x154   :  { %1156 = vmatpush3.bf16.msra.mxu0 %v1155_v57 }
 0x155   :  { %1157 = vmatprep.subr.bf16.mxu0 %v1270_v55 }
 0x158   :  { %1159 = vmatpush3.bf16.msra.mxu0 %v1158_v60 }
 0x159   :  { %1160 = vmatprep.subr.bf16.mxu0 %v1270_v55 }
 0x15c   :  { %1162 = vmatpush3.bf16.msra.mxu0 %v1161_v63 }
 0x15d   :  { %1163 = vmatprep.subr.bf16.mxu0 %v1270_v55 }
 0x160   :  { %1165 = vmatpush3.bf16.msra.mxu0 %v1164_v2 }
 0x161   :  { %1166 = vmatprep.subr.bf16.mxu0 %v1270_v55 }
 0x164   :  { %1168 = vmatpush3.bf16.msra.mxu0 %v1167_v5 }
 0x165   :  { %1169 = vmatprep.subr.bf16.mxu0 %v1270_v55 }
 0x19a   :  { %v419_v7 = vpop.permute.xlu1 %418 }
 0x19d   :  { %v431_v16 = vpop.permute.xlu0 %430 }
 0x19e   :  { %v421_v9 = vpop.permute.xlu1 %420 }
 0x19f   :  { %v423_v10 = vsel %vm422_vm2, %v419_v7, %v421_v9  ;;  %v427_v22 = vmax.f32 %v412_v31, %v421_v9  ;;  %v550_v31 = vld [vmem:[#allocation4 + $0xb8] sm:$0xff]  ;;  %v469_v9 = vld [vmem:[%s1456_s3 + $0x1] ss:$0 sm:$0xff] }
 0x1a0   :  { %v426_v11 = vmax.f32 %v411_v8, %v423_v10  ;;  %v646_v7 = vld [vmem:[#allocation4 + $0x178] sm:$0xff] }
 0x1a1   :  { %v1170_v8 = vpack.c.bf16 %v646_v7, %v645_v6 }
 0x1a3   :  { %1171 = vmatpush3.bf16.msra.mxu0 %v1170_v8 }
 0x1a4   :  { %1172 = vmatprep.subr.bf16.mxu0 %v1270_v55 }
 0x1bf   :  { %v433_v19 = vpop.permute.xlu0 %432 }
 0x1c0   :  { %v434_v20 = vsel %vm422_vm2, %v431_v16, %v433_v19  ;;  %v438_v18 = vmax.f32 %v414_v36, %v433_v19  ;;  %v551_v36 = vld [vmem:[#allocation4 + $0xc0] sm:$0xff]  ;;  %v648_v16 = vld [vmem:[#allocation4 + $0x188] sm:$0xff] }
 0x1c1   :  { %v437_v21 = vmax.f32 %v413_v35, %v434_v20  ;;  %v1134_v35 = vpack.c.bf16 %v550_v31, %v549_v29  ;;  %v1137_v38 = vpack.c.bf16 %v552_v37, %v551_v36  ;;  %v1173_v19 = vpack.c.bf16 %v648_v16, %v647_v15  ;;  %v721_v20 = vld [vmem:[#allocation4 + $0x190] sm:$0xff]  ;;  %v731_v37 = vld [vmem:[#allocation4 + $0x1e0] sm:$0xff] }
 0x1c2   :  { %443 = vrot.lane.b32.xlu1 %v438_v18, %s1273_s21  ;;  %v722_v18 = vld [vmem:[#allocation4 + $0x198] sm:$0xff] }
 0x1c3   :  { %441 = vrot.lane.b32.xlu0 %v437_v21, %s1273_s21  ;;  %1174 = vmatpush3.bf16.msra.mxu0 %v1173_v19  ;;  %v723_v21 = vld [vmem:[#allocation4 + $0x1a0] sm:$0xff] }
 0x1c4   :  { %v1179_v17 = vpack.c.bf16 %v724_v23, %v723_v21 }
 0x234   :  { %v444_v24 = vpop.permute.xlu1 %443 }
 0x235   :  { %v450_v25 = vmax.f32 %v427_v22, %v444_v24  ;;  %v442_v26 = vpop.permute.xlu0 %441  ;;  %v1176_v22 = vpack.c.bf16 %v722_v18, %v721_v20 }
 0x236   :  { %v446_v27 = vsel %vm445_vm3, %v442_v26, %v444_v24  ;;  %v725_v24 = vld [vmem:[#allocation4 + $0x1b0] sm:$0xff] }
 0x237   :  { %v449_v30 = vmax.f32 %v426_v11, %v446_v27  ;;  %843 = vmatprep.mubr.msk.f32.mxu1 %vm470_vm4, %v450_v25  ;;  %v726_v25 = vld [vmem:[#allocation4 + $0x1b8] sm:$0xff]  ;;  %v728_v27 = vld [vmem:[#allocation4 + $0x1c8] sm:$0xff] }
 0x238   :  { %v1182_v26 = vpack.c.bf16 %v726_v25, %v725_v24 }
 0x239   :  { %539 = vmatmul.mubr.f32.vlgmr.msra.gmra.mrb[2].mxu1 %v449_v30  ;;  %v729_v30 = vld [vmem:[#allocation4 + $0x1d0] sm:$0xff] }
 0x23a   :  { %1129 = vmatpush3.bf16.msra.mxu1 %v1128_v28  ;;  %928 = vmatprep.mubr.msk.f32.mxu1 %vm1274_vm5, %v1271_v14  ;;  %v1188_v32 = vpack.c.bf16 %v730_v33, %v729_v30 }
 0x23b   :  { %1130 = vmatprep.subr.bf16.mxu1 %v1270_v55 }
 0x23e   :  { %1132 = vmatpush3.bf16.msra.mxu1 %v1131_v34  ;;  %v561_v34 = vld [vmem:[%s1456_s3 + $0x2] ss:$0 sm:$0xff] }
 0x23f   :  { %1133 = vmatprep.subr.bf16.mxu1 %v1270_v55 }
 0x242   :  { %1135 = vmatpush3.bf16.msra.mxu1 %v1134_v35 }
 0x243   :  { %1136 = vmatprep.subr.bf16.mxu1 %v1270_v55 }
 0x246   :  { %1138 = vmatpush3.bf16.msra.mxu1 %v1137_v38  ;;  %v732_v38 = vld [vmem:[#allocation4 + $0x1e8] sm:$0xff] }
 0x247   :  { %1139 = vmatprep.subr.bf16.mxu1 %v1270_v55  ;;  %v1191_v39 = vpack.c.bf16 %v732_v38, %v731_v37 }
 0x24a   :  { %1141 = vmatpush3.bf16.msra.mxu1 %v1140_v41  ;;  %v734_v41 = vld [vmem:[#allocation4 + $0x1f8] sm:$0xff] }
 0x24b   :  { %1142 = vmatprep.subr.bf16.mxu1 %v1270_v55  ;;  %v1194_v42 = vpack.c.bf16 %v734_v41, %v733_v40 }
 0x24e   :  { %1144 = vmatpush3.bf16.msra.mxu1 %v1143_v44  ;;  %v736_v44 = vld [vmem:[#allocation4 + $0x208] sm:$0xff] }
 0x24f   :  { %1145 = vmatprep.subr.bf16.mxu1 %v1270_v55  ;;  %v1197_v45 = vpack.c.bf16 %v736_v44, %v735_v43 }
 0x252   :  { %1147 = vmatpush3.bf16.msra.mxu1 %v1146_v47 }
 0x253   :  { %1148 = vmatprep.subr.bf16.mxu1 %v1270_v55 }
 0x256   :  { %1150 = vmatpush3.bf16.msra.mxu1 %v1149_v50 }
 0x257   :  { %1175 = vmatprep.subr.bf16.mxu1 %v1270_v55 }
 0x30c   :  { %v540_v10 = vpop.f32.mrb[2].mxu1 }
 0x30d   :  { %v541_v11 = vadd.f32 %v540_v10, %v469_v9  ;;  %v542_v12 = vpop.f32.mrb[3].mxu1 }
 0x30f   :  { %v544_v13 = vmax.f32 %v541_v11, 0.0 }
 0x311   :  { %929 = vmatmul.mubr.f32.vlgmr.msra.gmra.mrb[4].mxu1 %v544_v13 }
 0x312   :  { %998 = vmatprep.mubr.msk.f32.mxu1 %vm1274_vm5, %v1271_v14  ;;  %1177 = vmatpush3.bf16.msra.mxu1 %v1176_v22  ;;  %v727_v14 = vld [vmem:[#allocation4 + $0x1c0] sm:$0xff] }
 0x313   :  { %1178 = vmatprep.subr.bf16.mxu1 %v1270_v55  ;;  %v1185_v28 = vpack.c.bf16 %v728_v27, %v727_v14 }
 0x316   :  { %1180 = vmatpush3.bf16.msra.mxu1 %v1179_v17 }
 0x317   :  { %1181 = vmatprep.subr.bf16.mxu1 %v1270_v55 }
 0x31a   :  { %1183 = vmatpush3.bf16.msra.mxu1 %v1182_v26 }
 0x31b   :  { %1184 = vmatprep.subr.bf16.mxu1 %v1270_v55 }
 0x31e   :  { %1186 = vmatpush3.bf16.msra.mxu1 %v1185_v28 }
 0x31f   :  { %1187 = vmatprep.subr.bf16.mxu1 %v1270_v55 }
 0x322   :  { %1189 = vmatpush3.bf16.msra.mxu1 %v1188_v32 }
 0x323   :  { %1190 = vmatprep.subr.bf16.mxu1 %v1270_v55 }
 0x326   :  { %1192 = vmatpush3.bf16.msra.mxu1 %v1191_v39 }
 0x327   :  { %1193 = vmatprep.subr.bf16.mxu1 %v1270_v55 }
 0x32a   :  { %1195 = vmatpush3.bf16.msra.mxu1 %v1194_v42 }
 0x32b   :  { %1196 = vmatprep.subr.bf16.mxu1 %v1270_v55  ;;  %v737_v55 = vld [vmem:[%s1456_s3 + $0x4] ss:$0 sm:$0xff] }
 0x32e   :  { %1198 = vmatpush3.bf16.msra.mxu1 %v1197_v45 }
 0x3e4   :  { %v628_v29 = vpop.f32.mrb[4].mxu1 }
 0x3e5   :  { %v629_v31 = vadd.f32 %v628_v29, %v561_v34  ;;  %v930_v35 = vpop.f32.mrb[5].mxu1 }
 0x3e7   :  { %v632_v36 = vmax.f32 %v629_v31, 0.0 }
 0x3e9   :  { %964 = vmatmul.mubr.f32.vlgmr.msra.gmra.mrb[4].mxu0 %v632_v36 }
 0x4bc   :  { %v716_v47 = vpop.f32.mrb[4].mxu0 }
 0x4bd   :  { %v717_v48 = vadd.f32 %v716_v47, %v649_v46  ;;  %v965_v49 = vpop.f32.mrb[5].mxu0 }
 0x4bf   :  { %1210 = vtanh.f32 %v717_v48 }
 0x4c9   :  { %v1211_v50 = vpop.eup %1210 }
 0x4ca   :  { %999 = vmatmul.mubr.f32.vlgmr.msra.gmra.mrb[6].mxu1 %v1211_v50 }
 0x59d   :  { %v804_v54 = vpop.f32.mrb[6].mxu1 }
 0x59e   :  { %v805_v56 = vadd.f32 %v804_v54, %v737_v55  ;;  %v1000_v57 = vpop.f32.mrb[7].mxu1 }
 0x5a0   :  { %v811_v58 = vadd.f32 %v810_v53, %v805_v56 }
 0x5a2   :  { %v813_v59 = vsel %vm812_vm6, %v811_v58, -inf }
 0x5a3   :  { %814 = vmax.xlane.f32.xlu0 %v813_v59 }
 0x630   :  { %v815_v60 = vpop.xlane.xlu0 %814 }
 0x631   :  { %v816_v61 = vsub.f32 %v811_v58, %v815_v60 }
 0x633   :  { %v817_v62 = vmul.f32 1.442695, %v816_v61 }
 0x635   :  { %1212 = vpow2.f32 %v817_v62 }
 0x63f   :  { %v1213_v63 = vpop.eup %1212 }
 0x640   :  { %v819_v0 = vsel %vm812_vm6, %v1213_v63, 0.0 }
 0x641   :  { %820 = vadd.xlane.f32.xlu1 %v819_v0 }
 0x6ce   :  { %v821_v1 = vpop.xlane.xlu1 %820 }
 0x6cf   :  { %1214 = vlog2.f32 %v821_v1 }
 0x6d9   :  { %v1215_v2 = vpop.eup %1214 }
 0x6da   :  { %v823_v3 = vmul.f32 0.6931472, %v1215_v2 }
 0x6dc   :  { %v824_v4 = vadd.f32 %v823_v3, %v815_v60 }
 0x6de   :  { %v825_v5 = vmul.f32 %v824_v4, %v808_v51 }
 0x6e0   :  { %v826_v6 = vsub.f32 %v805_v56, %v825_v5 }
 0x6e2   :  { %827 = vst [vmem:[%s1457_s4] sm:$0x3] %v826_v6 }
 0x6e3   :  { %832 = vsyncpa [#allocation3], 1 }
 0x6e4   :  { %833 = vsyncpa [#allocation5], 1 }

</bundles_post_ra>
